<compile_context>
chip_gen: v5e
topology: v5e:2x2
jax: 0.10.0
libtpu: 0.0.40
codegen_flags: <defaults>
</compile_context>

<pallas_src>
import functools

import jax
import jax.numpy as jnp
from jax.experimental import pallas as pl
from jax.experimental.pallas import tpu as pltpu


def _round_up(x, m):
    return (x + m - 1) // m * m


def _vmem_cost(th, width, cin, cout, in_bytes, out_bytes):
    """Rough per-grid-step VMEM footprint (lane/sublane padded, double buffered)."""
    cin_p = _round_up(cin, 128)
    cout_p = _round_up(cout, 128)
    w_p = _round_up(width, 8)
    x_blk = th * w_p * cin_p * in_bytes              # main input row block
    halo = 2 * w_p * cin_p * in_bytes                # two 1-row halo blocks
    o_blk = th * w_p * cout_p * out_bytes            # output block
    work = 4 * (th + 2) * w_p * cin_p * in_bytes     # in-kernel shifted windows
    acc = th * w_p * cout_p * 4                      # f32 accumulator
    wgt = 9 * cin_p * cout_p * in_bytes + cout_p * 4
    return 2 * (x_blk + halo + o_blk) + work + acc + wgt


def _pick_row_tile(h, width, cin, cout, in_bytes, out_bytes, budget=12 << 20):
    """Largest multiple-of-8 divisor of H whose per-step footprint fits the
    budget while leaving >= 2 row tiles (pipelining + megacore)."""
    cands = [d for d in range(8, h + 1, 8) if h % d == 0]
    if not cands:
        return h                              # tiny / odd H: single row tile
    best = cands[0]
    for d in cands:
        if (_vmem_cost(d, width, cin, cout, in_bytes, out_bytes) <= budget
                and h // d >= 2):
            best = d
    return best


def _conv3x3_kernel(xm_ref, xt_ref, xb_ref, w_ref, b_ref, o_ref, *, use_refl):
    # xm_ref: (1, TH, W, Cin)   main rows of this tile (compute dtype, bf16)
    # xt_ref: (1, 1,  W, Cin)   row just above the tile (or edge row)
    # xb_ref: (1, 1,  W, Cin)   row just below the tile (or edge row)
    # w_ref : (3, 3, Cin, Cout) HWIO weights (compute dtype)
    # b_ref : (1, Cout)         bias, f32
    # o_ref : (1, TH, W, Cout)  output tile
    th = xm_ref.shape[1]
    width = xm_ref.shape[2]
    cin = xm_ref.shape[3]
    cout = w_ref.shape[3]

    top = xt_ref[0]
    bot = xb_ref[0]
    if not use_refl:
        # ZeroPad2d path: the border rows fetched at the image edge are zeroed.
        hi = pl.program_id(1)
        top = top * (hi > 0).astype(top.dtype)
        bot = bot * (hi < pl.num_programs(1) - 1).astype(bot.dtype)

    # (TH+2, W, Cin) row window (halo rows come from the extra 1-row blocks,
    # so no wrapper-side jnp.pad of the whole image is needed).
    rows = jnp.concatenate([top, xm_ref[0], bot], axis=0)

    # W-edge columns: reflection (col 1 / col W-2) or zeros.
    if use_refl:
        left = rows[:, 1:2, :]
        right = rows[:, width - 2:width - 1, :]
    else:
        left = jnp.zeros((th + 2, 1, cin), rows.dtype)
        right = left

    # Three kw-shifted variants of the padded window, each (TH+2, W, Cin).
    # Built once and reused for the three kh taps (aligned reshapes/slices)
    # instead of nine per-tap unaligned window slices.
    shifted = (
        jnp.concatenate([left, rows[:, :width - 1, :]], axis=1),   # kw = 0
        rows,                                                      # kw = 1
        jnp.concatenate([rows[:, 1:, :], right], axis=1),          # kw = 2
    )

    acc = None  # (TH*W, Cout) f32; first tap initializes it (no zeros pass).
    for kw in range(3):
        cols = shifted[kw].reshape((th + 2) * width, cin)          # aligned merge
        for kh in range(3):
            patch = cols[kh * width:(kh + th) * width, :]          # aligned slice
            y = jnp.dot(patch, w_ref[kh, kw],
                        preferred_element_type=jnp.float32)        # bf16 MXU, f32 acc
            acc = y if acc is None else acc + y

    out = acc.reshape(th, width, cout) + b_ref[...]                # f32 bias add
    o_ref[...] = out.reshape(o_ref.shape).astype(o_ref.dtype)


def conv3x3(x_nchw, weight_oihw, bias, use_refl=True,
            compute_dtype=jnp.bfloat16):
    """Equivalent of Conv3x3.forward. x_nchw: (N, Cin, H, W) -> (N, Cout, H, W)."""
    n, cin, h, width = x_nchw.shape
    cout = weight_oihw.shape[0]
    out_dtype = x_nchw.dtype

    # ---- glue: NCHW-facing interface -> NHWC compute layout ----
    # TODO(synk): if the surrounding model is kept NHWC end to end, both
    # transposes (full HBM round trips) disappear.
    x_nhwc = jnp.transpose(x_nchw, (0, 2, 3, 1)).astype(compute_dtype)
    w_hwio = jnp.transpose(weight_oihw, (2, 3, 1, 0)).astype(compute_dtype)
    b2 = bias.reshape(1, cout).astype(jnp.float32)

    in_bytes = jnp.dtype(compute_dtype).itemsize
    out_bytes = jnp.dtype(out_dtype).itemsize
    th = _pick_row_tile(h, width, cin, cout, in_bytes, out_bytes)
    n_h = h // th

    # Row index used for the halo block at the image border.
    top_edge = 1 if use_refl else 0            # reflection of row -1 is row 1
    bot_edge = (h - 2) if use_refl else (h - 1)

    in_specs = [
        # main TH output rows of this tile
        pl.BlockSpec((1, th, width, cin), lambda ni, hi: (ni, hi, 0, 0)),
        # 1-row halo above the tile (block size 1 -> element-level row index)
        pl.BlockSpec((1, 1, width, cin),
                     lambda ni, hi: (ni, jnp.where(hi == 0, top_edge,
                                                   hi * th - 1), 0, 0)),
        # 1-row halo below the tile
        pl.BlockSpec((1, 1, width, cin),
                     lambda ni, hi: (ni, jnp.where(hi == n_h - 1, bot_edge,
                                                   (hi + 1) * th), 0, 0)),
        pl.BlockSpec((3, 3, cin, cout), lambda ni, hi: (0, 0, 0, 0)),
        pl.BlockSpec((1, cout), lambda ni, hi: (0, 0)),
    ]
    # TODO(synk): for Cout << 128 a lane-dense (1, TH, W*Cout) output slab would
    # avoid masked stores; kept NHWC since the (W, Cout) block is still one
    # contiguous HBM region per tile and decoder widths are usually >= 64.
    out_spec = pl.BlockSpec((1, th, width, cout), lambda ni, hi: (ni, hi, 0, 0))

    est = _vmem_cost(th, width, cin, cout, in_bytes, out_bytes)
    vmem_limit = int(min(48 << 20, max(16 << 20, 4 * est)))  # << 64 MiB (v7x)

    out_nhwc = pl.pallas_call(
        functools.partial(_conv3x3_kernel, use_refl=use_refl),
        out_shape=jax.ShapeDtypeStruct((n, h, width, cout), out_dtype),
        grid_spec=pltpu.PrefetchScalarGridSpec(
            num_scalar_prefetch=0,
            grid=(n, n_h),
            in_specs=in_specs,
            out_specs=out_spec,
        ),
        compiler_params=pltpu.CompilerParams(
            dimension_semantics=("parallel", "parallel"),
            vmem_limit_bytes=vmem_limit),
    )(x_nhwc, x_nhwc, x_nhwc, w_hwio, b2)

    return jnp.transpose(out_nhwc, (0, 3, 1, 2))               # NHWC -> NCHW


if __name__ == "__main__":
    key = jax.random.PRNGKey(0)
    k_x, k_w, k_b = jax.random.split(key, 3)

    N, Cin, Cout, H, W = 2, 4, 8, 16, 16
    x = jax.random.normal(k_x, (N, Cin, H, W), dtype=jnp.float32)

    # Deterministic param init (PyTorch Conv2d default: U(-bound, bound))
    fan_in = Cin * 3 * 3
    bound = 1.0 / (fan_in ** 0.5)
    weight = jax.random.uniform(k_w, (Cout, Cin, 3, 3), jnp.float32,
                                minval=-bound, maxval=bound)
    bias = jax.random.uniform(k_b, (Cout,), jnp.float32,
                              minval=-bound, maxval=bound)

    out = conv3x3(x, weight, bias, use_refl=True)
    jax.block_until_ready(out)
    assert out.shape == (N, Cout, H, W)

    # Reference with the same bf16-rounded inputs and f32 accumulation
    # (isolates kernel correctness from the deliberate bf16 MXU cast).
    xb = x.astype(jnp.bfloat16).astype(jnp.float32)
    wb = weight.astype(jnp.bfloat16).astype(jnp.float32)

    def ref_conv(xf, pad_mode):
        xp = jnp.pad(xf, ((0, 0), (0, 0), (1, 1), (1, 1)), mode=pad_mode)
        y = jax.lax.conv_general_dilated(
            xp, wb, window_strides=(1, 1), padding="VALID",
            dimension_numbers=("NCHW", "OIHW", "NCHW"))
        return y + bias[None, :, None, None]

    ref = ref_conv(xb, "reflect")
    assert jnp.allclose(out, ref, atol=2e-3, rtol=2e-3), (
        float(jnp.max(jnp.abs(out - ref))))

    # ZeroPad2d path (use_refl=False)
    out0 = conv3x3(x, weight, bias, use_refl=False)
    jax.block_until_ready(out0)
    ref0 = ref_conv(xb, "constant")
    assert jnp.allclose(out0, ref0, atol=2e-3, rtol=2e-3), (
        float(jnp.max(jnp.abs(out0 - ref0))))

    print("KERNEL_OK")
</pallas_src>

<mosaic_0001>
module attributes {stable_mosaic.version = 11 : i64} {
  func.func @_conv3x3_kernel(%arg0: i32, %arg1: i32, %arg2: memref<1x8x16x4xbf16, #tpu.memory_space<vmem>>, %arg3: memref<1x1x16x4xbf16, #tpu.memory_space<vmem>>, %arg4: memref<1x1x16x4xbf16, #tpu.memory_space<vmem>>, %arg5: memref<3x3x4x8xbf16, #tpu.memory_space<vmem>>, %arg6: memref<1x8xf32, #tpu.memory_space<vmem>>, %arg7: memref<1x8x16x8xf32, #tpu.memory_space<vmem>>) attributes {dimension_semantics = [#tpu.dimension_semantics<parallel>, #tpu.dimension_semantics<parallel>], iteration_bounds = array<i64: 2, 2>, scalar_prefetch = 0 : i64, scratch_operands = 0 : i64, tpu.core_type = #tpu.core_type<tc>, window_params = [{transform_indices = @transform_0, window_bounds = array<i64: 1, 8, 16, 4>}, {transform_indices = @transform_1, window_bounds = array<i64: 1, 1, 16, 4>}, {transform_indices = @transform_2, window_bounds = array<i64: 1, 1, 16, 4>}, {pipeline_mode = #tpu.pipeline_mode<synchronous>, transform_indices = @transform_3, window_bounds = array<i64: 3, 3, 4, 8>}, {pipeline_mode = #tpu.pipeline_mode<synchronous>, transform_indices = @transform_4, window_bounds = array<i64: 1, 8>}, {transform_indices = @transform_5, window_bounds = array<i64: 1, 8, 16, 8>}]} {
    %c0 = arith.constant 0 : index
    %c0_0 = arith.constant 0 : index
    %c0_1 = arith.constant 0 : index
    %c0_2 = arith.constant 0 : index
    %0 = vector.load %arg3[%c0, %c0_0, %c0_1, %c0_2] : memref<1x1x16x4xbf16, #tpu.memory_space<vmem>>, vector<1x1x16x4xbf16>
    %1 = vector.shape_cast %0 : vector<1x1x16x4xbf16> to vector<1x16x4xbf16>
    %c0_3 = arith.constant 0 : index
    %c0_4 = arith.constant 0 : index
    %c0_5 = arith.constant 0 : index
    %c0_6 = arith.constant 0 : index
    %2 = vector.load %arg4[%c0_3, %c0_4, %c0_5, %c0_6] : memref<1x1x16x4xbf16, #tpu.memory_space<vmem>>, vector<1x1x16x4xbf16>
    %3 = vector.shape_cast %2 : vector<1x1x16x4xbf16> to vector<1x16x4xbf16>
    %c0_7 = arith.constant 0 : index
    %c0_8 = arith.constant 0 : index
    %c0_9 = arith.constant 0 : index
    %c0_10 = arith.constant 0 : index
    %4 = vector.load %arg2[%c0_7, %c0_8, %c0_9, %c0_10] : memref<1x8x16x4xbf16, #tpu.memory_space<vmem>>, vector<1x8x16x4xbf16>
    %5 = vector.shape_cast %4 : vector<1x8x16x4xbf16> to vector<8x16x4xbf16>
    %6 = tpu.concatenate %1, %5, %3 in 0 : vector<1x16x4xbf16>, vector<8x16x4xbf16>, vector<1x16x4xbf16> -> vector<10x16x4xbf16>
    %7 = vector.extract_strided_slice %6 {offsets = [0, 1, 0], sizes = [10, 1, 4], strides = [1, 1, 1]} : vector<10x16x4xbf16> to vector<10x1x4xbf16>
    %8 = vector.extract_strided_slice %6 {offsets = [0, 14, 0], sizes = [10, 1, 4], strides = [1, 1, 1]} : vector<10x16x4xbf16> to vector<10x1x4xbf16>
    %9 = vector.extract_strided_slice %6 {offsets = [0, 0, 0], sizes = [10, 15, 4], strides = [1, 1, 1]} : vector<10x16x4xbf16> to vector<10x15x4xbf16>
    %10 = tpu.concatenate %7, %9 in 1 : vector<10x1x4xbf16>, vector<10x15x4xbf16> -> vector<10x16x4xbf16>
    %11 = vector.extract_strided_slice %6 {offsets = [0, 1, 0], sizes = [10, 15, 4], strides = [1, 1, 1]} : vector<10x16x4xbf16> to vector<10x15x4xbf16>
    %12 = tpu.concatenate %11, %8 in 1 : vector<10x15x4xbf16>, vector<10x1x4xbf16> -> vector<10x16x4xbf16>
    %13 = vector.shape_cast %10 : vector<10x16x4xbf16> to vector<160x4xbf16>
    %14 = vector.extract_strided_slice %13 {offsets = [0, 0], sizes = [128, 4], strides = [1, 1]} : vector<160x4xbf16> to vector<128x4xbf16>
    %c0_11 = arith.constant 0 : index
    %c0_12 = arith.constant 0 : index
    %c0_13 = arith.constant 0 : index
    %c0_14 = arith.constant 0 : index
    %15 = vector.load %arg5[%c0_11, %c0_12, %c0_13, %c0_14] : memref<3x3x4x8xbf16, #tpu.memory_space<vmem>>, vector<1x1x4x8xbf16>
    %16 = vector.shape_cast %15 : vector<1x1x4x8xbf16> to vector<4x8xbf16>
    %cst = arith.constant dense<0.000000e+00> : vector<128x8xf32>
    %17 = tpu.matmul %14, %16, %cst {dimension_numbers = #tpu.dot_dimension_numbers<[1], [0], [0], [1], [0, 0, 1, 1], [], []>} : vector<128x4xbf16>, vector<4x8xbf16>, vector<128x8xf32> -> vector<128x8xf32>
    %18 = vector.extract_strided_slice %13 {offsets = [16, 0], sizes = [128, 4], strides = [1, 1]} : vector<160x4xbf16> to vector<128x4xbf16>
    %c1 = arith.constant 1 : index
    %c0_15 = arith.constant 0 : index
    %c0_16 = arith.constant 0 : index
    %c0_17 = arith.constant 0 : index
    %19 = vector.load %arg5[%c1, %c0_15, %c0_16, %c0_17] : memref<3x3x4x8xbf16, #tpu.memory_space<vmem>>, vector<1x1x4x8xbf16>
    %20 = vector.shape_cast %19 : vector<1x1x4x8xbf16> to vector<4x8xbf16>
    %cst_18 = arith.constant dense<0.000000e+00> : vector<128x8xf32>
    %21 = tpu.matmul %18, %20, %cst_18 {dimension_numbers = #tpu.dot_dimension_numbers<[1], [0], [0], [1], [0, 0, 1, 1], [], []>} : vector<128x4xbf16>, vector<4x8xbf16>, vector<128x8xf32> -> vector<128x8xf32>
    %22 = arith.addf %17, %21 : vector<128x8xf32>
    %23 = vector.extract_strided_slice %13 {offsets = [32, 0], sizes = [128, 4], strides = [1, 1]} : vector<160x4xbf16> to vector<128x4xbf16>
    %c2 = arith.constant 2 : index
    %c0_19 = arith.constant 0 : index
    %c0_20 = arith.constant 0 : index
    %c0_21 = arith.constant 0 : index
    %24 = vector.load %arg5[%c2, %c0_19, %c0_20, %c0_21] : memref<3x3x4x8xbf16, #tpu.memory_space<vmem>>, vector<1x1x4x8xbf16>
    %25 = vector.shape_cast %24 : vector<1x1x4x8xbf16> to vector<4x8xbf16>
    %cst_22 = arith.constant dense<0.000000e+00> : vector<128x8xf32>
    %26 = tpu.matmul %23, %25, %cst_22 {dimension_numbers = #tpu.dot_dimension_numbers<[1], [0], [0], [1], [0, 0, 1, 1], [], []>} : vector<128x4xbf16>, vector<4x8xbf16>, vector<128x8xf32> -> vector<128x8xf32>
    %27 = arith.addf %22, %26 : vector<128x8xf32>
    %28 = vector.shape_cast %6 : vector<10x16x4xbf16> to vector<160x4xbf16>
    %29 = vector.extract_strided_slice %28 {offsets = [0, 0], sizes = [128, 4], strides = [1, 1]} : vector<160x4xbf16> to vector<128x4xbf16>
    %c0_23 = arith.constant 0 : index
    %c1_24 = arith.constant 1 : index
    %c0_25 = arith.constant 0 : index
    %c0_26 = arith.constant 0 : index
    %30 = vector.load %arg5[%c0_23, %c1_24, %c0_25, %c0_26] : memref<3x3x4x8xbf16, #tpu.memory_space<vmem>>, vector<1x1x4x8xbf16>
    %31 = vector.shape_cast %30 : vector<1x1x4x8xbf16> to vector<4x8xbf16>
    %cst_27 = arith.constant dense<0.000000e+00> : vector<128x8xf32>
    %32 = tpu.matmul %29, %31, %cst_27 {dimension_numbers = #tpu.dot_dimension_numbers<[1], [0], [0], [1], [0, 0, 1, 1], [], []>} : vector<128x4xbf16>, vector<4x8xbf16>, vector<128x8xf32> -> vector<128x8xf32>
    %33 = arith.addf %27, %32 : vector<128x8xf32>
    %34 = vector.extract_strided_slice %28 {offsets = [16, 0], sizes = [128, 4], strides = [1, 1]} : vector<160x4xbf16> to vector<128x4xbf16>
    %c1_28 = arith.constant 1 : index
    %c1_29 = arith.constant 1 : index
    %c0_30 = arith.constant 0 : index
    %c0_31 = arith.constant 0 : index
    %35 = vector.load %arg5[%c1_28, %c1_29, %c0_30, %c0_31] : memref<3x3x4x8xbf16, #tpu.memory_space<vmem>>, vector<1x1x4x8xbf16>
    %36 = vector.shape_cast %35 : vector<1x1x4x8xbf16> to vector<4x8xbf16>
    %cst_32 = arith.constant dense<0.000000e+00> : vector<128x8xf32>
    %37 = tpu.matmul %34, %36, %cst_32 {dimension_numbers = #tpu.dot_dimension_numbers<[1], [0], [0], [1], [0, 0, 1, 1], [], []>} : vector<128x4xbf16>, vector<4x8xbf16>, vector<128x8xf32> -> vector<128x8xf32>
    %38 = arith.addf %33, %37 : vector<128x8xf32>
    %39 = vector.extract_strided_slice %28 {offsets = [32, 0], sizes = [128, 4], strides = [1, 1]} : vector<160x4xbf16> to vector<128x4xbf16>
    %c2_33 = arith.constant 2 : index
    %c1_34 = arith.constant 1 : index
    %c0_35 = arith.constant 0 : index
    %c0_36 = arith.constant 0 : index
    %40 = vector.load %arg5[%c2_33, %c1_34, %c0_35, %c0_36] : memref<3x3x4x8xbf16, #tpu.memory_space<vmem>>, vector<1x1x4x8xbf16>
    %41 = vector.shape_cast %40 : vector<1x1x4x8xbf16> to vector<4x8xbf16>
    %cst_37 = arith.constant dense<0.000000e+00> : vector<128x8xf32>
    %42 = tpu.matmul %39, %41, %cst_37 {dimension_numbers = #tpu.dot_dimension_numbers<[1], [0], [0], [1], [0, 0, 1, 1], [], []>} : vector<128x4xbf16>, vector<4x8xbf16>, vector<128x8xf32> -> vector<128x8xf32>
    %43 = arith.addf %38, %42 : vector<128x8xf32>
    %44 = vector.shape_cast %12 : vector<10x16x4xbf16> to vector<160x4xbf16>
    %45 = vector.extract_strided_slice %44 {offsets = [0, 0], sizes = [128, 4], strides = [1, 1]} : vector<160x4xbf16> to vector<128x4xbf16>
    %c0_38 = arith.constant 0 : index
    %c2_39 = arith.constant 2 : index
    %c0_40 = arith.constant 0 : index
    %c0_41 = arith.constant 0 : index
    %46 = vector.load %arg5[%c0_38, %c2_39, %c0_40, %c0_41] : memref<3x3x4x8xbf16, #tpu.memory_space<vmem>>, vector<1x1x4x8xbf16>
    %47 = vector.shape_cast %46 : vector<1x1x4x8xbf16> to vector<4x8xbf16>
    %cst_42 = arith.constant dense<0.000000e+00> : vector<128x8xf32>
    %48 = tpu.matmul %45, %47, %cst_42 {dimension_numbers = #tpu.dot_dimension_numbers<[1], [0], [0], [1], [0, 0, 1, 1], [], []>} : vector<128x4xbf16>, vector<4x8xbf16>, vector<128x8xf32> -> vector<128x8xf32>
    %49 = arith.addf %43, %48 : vector<128x8xf32>
    %50 = vector.extract_strided_slice %44 {offsets = [16, 0], sizes = [128, 4], strides = [1, 1]} : vector<160x4xbf16> to vector<128x4xbf16>
    %c1_43 = arith.constant 1 : index
    %c2_44 = arith.constant 2 : index
    %c0_45 = arith.constant 0 : index
    %c0_46 = arith.constant 0 : index
    %51 = vector.load %arg5[%c1_43, %c2_44, %c0_45, %c0_46] : memref<3x3x4x8xbf16, #tpu.memory_space<vmem>>, vector<1x1x4x8xbf16>
    %52 = vector.shape_cast %51 : vector<1x1x4x8xbf16> to vector<4x8xbf16>
    %cst_47 = arith.constant dense<0.000000e+00> : vector<128x8xf32>
    %53 = tpu.matmul %50, %52, %cst_47 {dimension_numbers = #tpu.dot_dimension_numbers<[1], [0], [0], [1], [0, 0, 1, 1], [], []>} : vector<128x4xbf16>, vector<4x8xbf16>, vector<128x8xf32> -> vector<128x8xf32>
    %54 = arith.addf %49, %53 : vector<128x8xf32>
    %55 = vector.extract_strided_slice %44 {offsets = [32, 0], sizes = [128, 4], strides = [1, 1]} : vector<160x4xbf16> to vector<128x4xbf16>
    %c2_48 = arith.constant 2 : index
    %c2_49 = arith.constant 2 : index
    %c0_50 = arith.constant 0 : index
    %c0_51 = arith.constant 0 : index
    %56 = vector.load %arg5[%c2_48, %c2_49, %c0_50, %c0_51] : memref<3x3x4x8xbf16, #tpu.memory_space<vmem>>, vector<1x1x4x8xbf16>
    %57 = vector.shape_cast %56 : vector<1x1x4x8xbf16> to vector<4x8xbf16>
    %cst_52 = arith.constant dense<0.000000e+00> : vector<128x8xf32>
    %58 = tpu.matmul %55, %57, %cst_52 {dimension_numbers = #tpu.dot_dimension_numbers<[1], [0], [0], [1], [0, 0, 1, 1], [], []>} : vector<128x4xbf16>, vector<4x8xbf16>, vector<128x8xf32> -> vector<128x8xf32>
    %59 = arith.addf %54, %58 : vector<128x8xf32>
    %60 = vector.shape_cast %59 : vector<128x8xf32> to vector<8x16x8xf32>
    %c0_53 = arith.constant 0 : index
    %c0_54 = arith.constant 0 : index
    %61 = vector.load %arg6[%c0_53, %c0_54] : memref<1x8xf32, #tpu.memory_space<vmem>>, vector<1x8xf32>
    %62 = vector.shape_cast %61 : vector<1x8xf32> to vector<1x1x8xf32>
    %63 = vector.broadcast %62 : vector<1x1x8xf32> to vector<8x16x8xf32>
    %64 = arith.addf %60, %63 : vector<8x16x8xf32>
    %65 = vector.shape_cast %64 : vector<8x16x8xf32> to vector<1x8x16x8xf32>
    %c0_55 = arith.constant 0 : index
    %c0_56 = arith.constant 0 : index
    %c0_57 = arith.constant 0 : index
    %c0_58 = arith.constant 0 : index
    %66 = vector.load %arg7[%c0_55, %c0_56, %c0_57, %c0_58] : memref<1x8x16x8xf32, #tpu.memory_space<vmem>>, vector<1x8x16x8xf32>
    tpu.vector_store %arg7[%c0_55, %c0_56, %c0_57, %c0_58], %65 {strides = array<i32>} : memref<1x8x16x8xf32, #tpu.memory_space<vmem>>, vector<1x8x16x8xf32>,
    return
  }
  func.func @transform_0(%arg0: i32, %arg1: i32) -> (i32, i32, i32, i32) {
    %c0_i32 = arith.constant 0 : i32
    %c0_i32_0 = arith.constant 0 : i32
    %c0_i32_1 = arith.constant 0 : i32
    return %arg0, %arg1, %c0_i32, %c0_i32_0 : i32, i32, i32, i32
  }
  func.func @transform_1(%arg0: i32, %arg1: i32) -> (i32, i32, i32, i32) {
    %c0_i32 = arith.constant 0 : i32
    %0 = arith.cmpi eq, %arg1, %c0_i32 : i32
    %c8_i32 = arith.constant 8 : i32
    %1 = arith.muli %arg1, %c8_i32 : i32
    %c1_i32 = arith.constant 1 : i32
    %2 = arith.subi %1, %c1_i32 : i32
    %c1_i32_0 = arith.constant 1 : i32
    %3 = arith.select %0, %c1_i32_0, %2 : i32
    %c0_i32_1 = arith.constant 0 : i32
    %c0_i32_2 = arith.constant 0 : i32
    %c0_i32_3 = arith.constant 0 : i32
    return %arg0, %3, %c0_i32_1, %c0_i32_2 : i32, i32, i32, i32
  }
  func.func @transform_2(%arg0: i32, %arg1: i32) -> (i32, i32, i32, i32) {
    %c1_i32 = arith.constant 1 : i32
    %0 = arith.cmpi eq, %arg1, %c1_i32 : i32
    %c1_i32_0 = arith.constant 1 : i32
    %1 = arith.addi %arg1, %c1_i32_0 : i32
    %c8_i32 = arith.constant 8 : i32
    %2 = arith.muli %1, %c8_i32 : i32
    %c14_i32 = arith.constant 14 : i32
    %3 = arith.select %0, %c14_i32, %2 : i32
    %c0_i32 = arith.constant 0 : i32
    %c0_i32_1 = arith.constant 0 : i32
    %c0_i32_2 = arith.constant 0 : i32
    return %arg0, %3, %c0_i32, %c0_i32_1 : i32, i32, i32, i32
  }
  func.func @transform_3(%arg0: i32, %arg1: i32) -> (i32, i32, i32, i32) {
    %c0_i32 = arith.constant 0 : i32
    %c0_i32_0 = arith.constant 0 : i32
    %c0_i32_1 = arith.constant 0 : i32
    %c0_i32_2 = arith.constant 0 : i32
    %c0_i32_3 = arith.constant 0 : i32
    return %c0_i32, %c0_i32_0, %c0_i32_1, %c0_i32_2 : i32, i32, i32, i32
  }
  func.func @transform_4(%arg0: i32, %arg1: i32) -> (i32, i32) {
    %c0_i32 = arith.constant 0 : i32
    %c0_i32_0 = arith.constant 0 : i32
    %c0_i32_1 = arith.constant 0 : i32
    return %c0_i32, %c0_i32_0 : i32, i32
  }
  func.func @transform_5(%arg0: i32, %arg1: i32) -> (i32, i32, i32, i32) {
    %c0_i32 = arith.constant 0 : i32
    %c0_i32_0 = arith.constant 0 : i32
    %c0_i32_1 = arith.constant 0 : i32
    return %arg0, %arg1, %c0_i32, %c0_i32_0 : i32, i32, i32, i32
  }
}

</mosaic_0001>

<bundles_post_ra>
// kernel: tpu_custom_call.1
= control target key start
LH: loop header
LB: loop body
LE: loop exit
PB: predicated region body
PF: predicated region fallthrough
CT: control target
= control target key end

     0   :  { %s1844_s18 = smov 0   ;;  %s1846_s19 = smov 0   ;;  %s2422_s0 = inlined_call_operand.vmem [shape: bf16[2,16,16,4], index: 0, kind: input, shape index: {}]   ;;  %s2423_s1 = inlined_call_operand.vmem [shape: bf16[2,16,16,4], index: 1, kind: input, shape index: {}]   ;;  %s2424_s2 = inlined_call_operand.vmem [shape: bf16[2,16,16,4], index: 2, kind: input, shape index: {}]   ;;  %s2425_s3 = inlined_call_operand.vmem [shape: bf16[3,3,4,8], index: 3, kind: input, shape index: {}]   ;;  %s2426_s4 = inlined_call_operand.vmem [shape: f32[1,8], index: 4, kind: input, shape index: {}]   ;;  %s2427_s5 = inlined_call_operand.vmem [shape: f32[2,16,16,8], index: 5, kind: output, shape index: {}]  }
   0x1   :  { %s1848_s20 = smov 0   ;;  %s1850_s21 = smov 0  }
   0x2   :  { %s1852_s22 = smov 0  }
   0x3 LB: > { %s24_s23 = sadd.s32 1, %s1804_s20  ;;  %s27_s24 = sadd.s32 1, %s1808_s21  ;;  %s1812_s22 = sphi %s1852_s22, %s15_s22   ;;  %s1808_s21 = sphi %s1850_s21, %s2435_s21   ;;  %s1804_s20 = sphi %s1848_s20, %s2434_s20   ;;  %s1800_s19 = sphi %s1846_s19, %s2433_s19   ;;  %s1796_s18 = sphi %s1844_s18, %s2432_s18  }
   0x4   : > { %p25_p0 = scmp.ge.s32.totalorder %s24_s23, 2  ;;  %p1577_p1 = scmp.ge.s32.totalorder %s1812_s22, 1 }
   0x5   : > { %p273_p2 = scmp.lt.s32.totalorder %s1812_s22, 5 }
   0x6   : > { %s2437_s23 = smov (%p25_p0, %s24_s23), 0  ;;  %s2439_s24 = smov (!%p25_p0, %s27_s24), %s1808_s21 }
   0x7   : > { %p274_p3 = pnand %p1577_p1, %p273_p2  ;;  %p29_p4 = scmp.ge.s32.totalorder %s2439_s24, 2 }
   0x8   : > { %s1880_s27 = sshll.u32 (!%p274_p3), %s1796_s18, 3  ;;  %p338_p5 = scmp.lt.s32.totalorder (!%p274_p3), %s1800_s19, 1 }
   0x9   : > { %s2441_s24 = smov (%p29_p4, %s2439_s24), 0  ;;  %277 = sbr.rel (%p274_p3) target bundleno = 451 (0x1c3), region = 40 }
   0xa   : > { %p340_p6 = scmp.lt.s32.totalorder (!%p274_p3), %s1880_s27, 15  ;;  %p348_p7 = scmp.eq.s32.totalorder (!%p274_p3), %s1796_s18, 0 }
   0xb   : > { %s1583_s15 = sadd.s32 (!%p274_p3), 4294967295, %s1880_s27  ;;  %p365_p9 = scmp.eq.s32.totalorder (!%p274_p3), %s1796_s18, 1 }
   0xc   : > { %s1682_s26 = sadd.s32 (!%p274_p3), 8, %s1880_s27 }
   0xe   : > { %v1595_v0 = vld [vmem:[%s2425_s3 + $0x6] sm:$0x3]  ;;  %vm738_vm0 = vcmask 1041408   ;;  %s2443_s19 = smov (!%p338_p5, %s1800_s19), 1  ;;  %v1612_v2 = vld [vmem:[%s2425_s3 + $0xc] sm:$0x3] }
   0xf   : > { %v740_v1 = vsel %vm738_vm0, %v1595_v0, 0  ;;  %v1621_v3 = vld [vmem:[%s2425_s3 + $0x2] sm:$0x3]  ;;  %s341_s7 = scalar_select %p340_p6, %s1880_s27, 15  ;;  %v852_v4 = vsel %vm738_vm0, %v1612_v2, 0  ;;  %vm594_vm2 = vcmask 1040384  }
  0x10   : > { %1730 = vmatpush.bf16.msra.mxu1 %v740_v1  ;;  %1731 = vmatpush.bf16.msra.mxu2 %v740_v1  ;;  %v938_v5 = vsel %vm738_vm0, %v1621_v3, 0  ;;  %v710_v6 = vld [vmem:[%s2425_s3] sm:$0x3]  ;;  %s1896_s10 = sshll.u32 %s2443_s19, 5  ;;  %v1630_v8 = vld [vmem:[%s2425_s3 + $0x8] sm:$0x3] }
  0x11   : > { %1732 = vmatpush.bf16.msra.mxu3 %v740_v1  ;;  %749 = vmatpush.bf16.msra.mxu0 %v740_v1  ;;  %v795_v7 = vsel %vm738_vm0, %v710_v6, 0  ;;  %s1579_s13 = sshll.u32 %s341_s7, 1  ;;  %v1010_v9 = vsel %vm738_vm0, %v1630_v8, 0  ;;  %vm595_vm1 = vsmask.f32 256  ;;  %vm713_vm3 = vcmask 31744  }
  0x12   : > { %s1905_s14 = sadd.s32 %s1896_s10, %s1579_s13  ;;  %s2445_s15 = smov (%p348_p7, %s1583_s15), 1  ;;  %vm1939_vm4 = vmand %vm594_vm2, %vm595_vm1  ;;  %vm697_vm5 = vcmask 1047552   ;;  %vm698_vm6 = vsmask.f32 7424  ;;  %vm1409_vm8 = vcmask 64512  }
  0x13   : > { %s1581_s16 = sshll.u32 %s1905_s14, 2  ;;  %p354_p8 = scmp.lt.s32.totalorder %s2445_s15, 15  ;;  %vm2183_vm7 = vmand %vm697_vm5, %vm698_vm6 }
  0x14   : > { %861 = vmatpush.bf16.msrb.mxu2 %v852_v4  ;;  %804 = vmatpush.bf16.msrb.mxu1 %v795_v7  ;;  %s1912_s25 = scalar_lea.vmem %s2422_s0, %s1581_s16  ;;  %s2449_s26 = smov (%p365_p9, %s1682_s26), 14  ;;  %v1648_v4 = vld [vmem:[%s2425_s3 + $0x4] sm:$0x3] }
  0x15   : > { %947 = vmatpush.bf16.msrb.mxu3 %v938_v5  ;;  %1019 = vmatpush.bf16.msrb.mxu0 %v1010_v9  ;;  %v1915_v10 = vld [vmem:[%s1912_s25 + $0x10] sm:$0xff]   ;;  %v1918_v11 = vld [vmem:[%s1912_s25 + $0x20] sm:$0xff]   ;;  %v1949_v31 = vld [vmem:[%s1912_s25 + $0x18] sm:$0xff]   ;;  %s2447_s15 = smov (!%p354_p8, %s2445_s15), 15  ;;  %p371_p10 = scmp.lt.s32.totalorder %s2449_s26, 15 }
  0x16   : > { %v1921_v12 = vld [vmem:[%s1912_s25 + $0x30] sm:$0xff]   ;;  %v1701_v13 = vunpack.c.l.b16 %v1915_v10  ;;  %v536_v14 = vshrl.u32 %v1915_v10, 16  ;;  %v539_v15 = vshll.u32 %v1915_v10, 16  ;;  %v1709_v16 = vunpack.c.l.b16 %v1918_v11  ;;  %v1928_v17 = vld [vmem:[%s1912_s25] sm:$0xff]   ;;  %v1970_v44 = vld [vmem:[%s1912_s25 + $0x28] sm:$0xff]   ;;  %s1584_s28 = sshll.u32 %s2447_s15, 1 }
  0x17   : > { %v550_v18 = vshrl.u32 %v1918_v11, 16  ;;  %v553_v19 = vshll.u32 %v1918_v11, 16  ;;  %v1717_v20 = vunpack.c.l.b16 %v1921_v12  ;;  %v564_v21 = vshrl.u32 %v1921_v12, 16  ;;  %v1985_v49 = vld [vmem:[%s1912_s25 + $0x38] sm:$0xff]   ;;  %v1997_v53 = vld [vmem:[%s1912_s25 + $0x8] sm:$0xff]   ;;  %s2008_s27 = sadd.s32 %s1584_s28, %s1896_s10  ;;  %s2451_s26 = smov (!%p371_p10, %s2449_s26), 15 }
  0x18   : > { %v437_v22 = vpack.c.b16 %v1701_v13, %v1701_v13  ;;  %v538_v23 = vrot.slane %v536_v14, 7  ;;  %v439_v24 = vpack.c.b16 %v1709_v16, %v1709_v16  ;;  %v567_v25 = vshll.u32 %v1921_v12, 16  ;;  %s1586_s18 = sshll.u32 %s2008_s27, 2  ;;  %v1657_v5 = vld [vmem:[%s2425_s3 + $0xa] sm:$0x3]  ;;  %s1588_s13 = sshll.u32 %s2451_s26, 1 }
  0x19   : > { %v552_v27 = vrot.slane %v550_v18, 7  ;;  %v441_v28 = vpack.c.b16 %v1717_v20, %v1717_v20  ;;  %v566_v29 = vrot.slane %v564_v21, 7  ;;  %v1693_v30 = vunpack.c.l.b16 %v1928_v17  ;;  %v1639_v9 = vld [vmem:[%s2425_s3 + $0xe] sm:$0x3]  ;;  %v1666_v13 = vld [vmem:[%s2425_s3 + $0x10] sm:$0x3]  ;;  %s2048_s15 = sadd.s32 %s1588_s13, %s1896_s10  ;;  %s360_s19 = scalar_lea.vmem %s2423_s1, %s1586_s18 }
  0x1a   : > { %v454_v32 = vshrl.u32 %v437_v22, 16  ;;  %v541_v33 = vor.u32 %v539_v15, %v538_v23  ;;  %v460_v34 = vshrl.u32 %v439_v24, 16  ;;  %v522_v35 = vshrl.u32 %v1928_v17, 16  ;;  %s1590_s10 = sshll.u32 %s2048_s15, 2  ;;  %s1594_s27 = sshll.u32 %s1905_s14, 3 }
  0x1b   : > { %v555_v36 = vor.u32 %v553_v19, %v552_v27  ;;  %v466_v37 = vshrl.u32 %v441_v28, 16  ;;  %v569_v38 = vor.u32 %v567_v25, %v566_v29  ;;  %v435_v39 = vpack.c.b16 %v1693_v30, %v1693_v30  ;;  %s377_s28 = scalar_lea.vmem %s2424_s2, %s1590_s10  ;;  %s2342_s7 = scalar_lea.vmem %s2427_s5, %s1594_s27 }
  0x1c   : > { %v1963_v40 = vsel %vm1939_vm4, %v454_v32, %v541_v33  ;;  %v524_v41 = vrot.slane %v522_v35, 7  ;;  %v525_v42 = vshll.u32 %v1928_v17, 16  ;;  %v1705_v43 = vunpack.c.l.b16 %v1949_v31 }
  0x1d   : > { %1598 = vmatmul.msk.bf16.vlgmr.msra.gmra.mxu1 %vm713_vm3, %v1963_v40  ;;  %v1977_v45 = vsel %vm1939_vm4, %v460_v34, %v555_v36  ;;  %v1981_v46 = vsel %vm1939_vm4, %v466_v37, %v569_v38  ;;  %v448_v47 = vshrl.u32 %v435_v39, 16  ;;  %v543_v48 = vshrl.u32 %v1949_v31, 16  ;;  %v2063_v39 = vld [vmem:[%s360_s19] sm:$0xff]  }
  0x1e   : > { %1600 = vmatmul.msk.bf16.vlgmr.msra.gmra.mxu2 %vm713_vm3, %v1977_v45  ;;  %1602 = vmatmul.msk.bf16.vlgmr.msra.gmra.mxu3 %vm713_vm3, %v1981_v46  ;;  %v527_v50 = vor.u32 %v525_v42, %v524_v41  ;;  %v1713_v51 = vunpack.c.l.b16 %v1970_v44  ;;  %v557_v52 = vshrl.u32 %v1970_v44, 16  ;;  %v1721_v55 = vunpack.c.l.b16 %v1985_v49 }
  0x1f   : > { %v571_v56 = vshrl.u32 %v1985_v49, 16  ;;  %v438_v57 = vpack.c.b16 %v1705_v43, %v1705_v43  ;;  %v545_v58 = vrot.slane %v543_v48, 7  ;;  %v546_v59 = vshll.u32 %v1949_v31, 16 }
  0x20   : > { %v2003_v54 = vsel %vm1939_vm4, %v448_v47, %v527_v50  ;;  %v440_v60 = vpack.c.b16 %v1713_v51, %v1713_v51  ;;  %v559_v61 = vrot.slane %v557_v52, 7  ;;  %v560_v62 = vshll.u32 %v1970_v44, 16 }
  0x21   : > { %1596 = vmatmul.msk.bf16.vlgmr.msra.gmra.mxu0 %vm713_vm3, %v2003_v54  ;;  %v1697_v63 = vunpack.c.l.b16 %v1997_v53  ;;  %v529_v0 = vshrl.u32 %v1997_v53, 16  ;;  %v442_v1 = vpack.c.b16 %v1721_v55, %v1721_v55  ;;  %v573_v2 = vrot.slane %v571_v56, 7 }
  0x22   : > { %v574_v3 = vshll.u32 %v1985_v49, 16  ;;  %v457_v6 = vshrl.u32 %v438_v57, 16  ;;  %v548_v7 = vor.u32 %v546_v59, %v545_v58  ;;  %v463_v8 = vshrl.u32 %v440_v60, 16 }
  0x23   : > { %v562_v16 = vor.u32 %v560_v62, %v559_v61  ;;  %v436_v20 = vpack.c.b16 %v1697_v63, %v1697_v63  ;;  %v531_v22 = vrot.slane %v529_v0, 7  ;;  %v532_v23 = vshll.u32 %v1997_v53, 16 }
  0x24   : > { %v469_v24 = vshrl.u32 %v442_v1, 16  ;;  %v576_v27 = vor.u32 %v574_v3, %v573_v2  ;;  %v1176_v28 = vsel %vm738_vm0, %v1648_v4, 0  ;;  %v1249_v29 = vsel %vm738_vm0, %v1657_v5, 0 }
  0x25   : > { %1185 = vmatpush.bf16.msra.mxu2 %v1176_v28  ;;  %1258 = vmatpush.bf16.msra.mxu3 %v1249_v29  ;;  %v1082_v30 = vsel %vm738_vm0, %v1639_v9, 0  ;;  %v1322_v32 = vsel %vm738_vm0, %v1666_v13, 0  ;;  %v601_v33 = vsel %vm1939_vm4, %v457_v6, %v548_v7  ;;  %v451_v34 = vshrl.u32 %v436_v20, 16 }
  0x26   : > { %1091 = vmatpush.bf16.msra.mxu1 %v1082_v30  ;;  %1331 = vmatpush.bf16.msra.mxu0 %v1322_v32  ;;  %v534_v36 = vor.u32 %v532_v23, %v531_v22  ;;  %v603_v37 = vsel %vm1939_vm4, %v463_v8, %v562_v16  ;;  %v605_v38 = vsel %vm1939_vm4, %v469_v24, %v576_v27  ;;  %v1685_v43 = vunpack.c.l.b16 %v2063_v39 }
  0x27   : > { %v515_v47 = vshrl.u32 %v2063_v39, 16  ;;  %v518_v55 = vshll.u32 %v2063_v39, 16  ;;  %v1686_v27 = vunpack.c.h.b16 %v2063_v39  ;;  %v1694_v28 = vunpack.c.h.b16 %v1928_v17 }
  0x28   : > { %v599_v41 = vsel %vm1939_vm4, %v451_v34, %v534_v36  ;;  %v434_v50 = vpack.c.b16 %v1685_v43, %v1685_v43  ;;  %v1698_v30 = vunpack.c.h.b16 %v1997_v53 }
  0x29   : > { %v517_v51 = vrot.slane %v515_v47, 7  ;;  %v637_v32 = vpack.c.b16 %v1686_v27, %v1686_v27 }
  0x2a   : > { %v445_v57 = vshrl.u32 %v434_v50, 16  ;;  %v611_v50 = vrot.slane %v532_v23, 1 }
  0x2b   : > { %v520_v58 = vor.u32 %v518_v55, %v517_v51 }
  0x2c   : > { %v612_v23 = vor.u32 %v611_v50, %v529_v0  ;;  %v1702_v0 = vunpack.c.h.b16 %v1915_v10 }
  0x2d   : > { %1599 = vmatmul.msk.bf16.gmra.mxu1 %vm713_vm3, %v601_v33  ;;  %v597_v60 = vsel %vm1939_vm4, %v445_v57, %v520_v58 }
  0x2e   : > { %1601 = vmatmul.msk.bf16.gmra.mxu2 %vm713_vm3, %v603_v37  ;;  %1603 = vmatmul.msk.bf16.gmra.mxu3 %vm713_vm3, %v605_v38 }
  0x31   : > { %1597 = vmatmul.msk.bf16.gmra.mxu0 %vm713_vm3, %v599_v41 }
  0x3d   : > { %1604 = vmatmul.msk.bf16.vlgmr.msrb.gmra.mxu1 %vm713_vm3, %v597_v60 }
  0x3e   : > { %1613 = vmatmul.msk.bf16.vlgmr.msrb.gmra.mxu2 %vm713_vm3, %v599_v41  ;;  %1622 = vmatmul.msk.bf16.vlgmr.msrb.gmra.mxu3 %vm713_vm3, %v2063_v39 }
  0x41   : > { %1631 = vmatmul.msk.bf16.vlgmr.msrb.gmra.mxu0 %vm713_vm3, %v1928_v17 }
  0x4d   : > { %1605 = vmatmul.msk.bf16.gmra.mxu1 %vm713_vm3, %v2003_v54  ;;  %v2128_v54 = vld [vmem:[%s377_s28] sm:$0xff]  }
  0x4e   : > { %1614 = vmatmul.msk.bf16.gmra.mxu2 %vm713_vm3, %v1963_v40  ;;  %1623 = vmatmul.msk.bf16.gmra.mxu3 %vm713_vm3, %v1928_v17  ;;  %v1689_v61 = vunpack.c.l.b16 %v2128_v54  ;;  %v578_v63 = vshrl.u32 %v2128_v54, 16  ;;  %v581_v7 = vshll.u32 %v2128_v54, 16 }
  0x50   : > { %v443_v5 = vpack.c.b16 %v1689_v61, %v1689_v61  ;;  %v580_v6 = vrot.slane %v578_v63, 7 }
  0x51   : > { %1632 = vmatmul.msk.bf16.gmra.mxu0 %vm713_vm3, %v1997_v53 }
  0x52   : > { %v472_v9 = vshrl.u32 %v443_v5, 16  ;;  %v583_v13 = vor.u32 %v581_v7, %v580_v6 }
  0x54   : > { %v606_v24 = vsel %vm1939_vm4, %v472_v9, %v583_v13 }
  0x5d   : > { %1606 = vmatmul.msk.bf16.gmra.mxu1 %vm713_vm3, %v599_v41  ;;  %v648_v41 = vshll.u32 %v637_v32, 16  ;;  %v640_v32 = vpack.c.b16 %v1702_v0, %v1702_v0 }
  0x5e   : > { %1615 = vmatmul.msk.bf16.gmra.mxu2 %vm713_vm3, %v601_v33  ;;  %1624 = vmatmul.msk.bf16.gmra.mxu3 %vm713_vm3, %v1997_v53 }
  0x5f   : > { %v650_v60 = vrot.slane %v648_v41, 4 }
  0x61   : > { %1633 = vmatmul.msk.bf16.gmra.mxu0 %vm713_vm3, %v1915_v10 }
  0x6d   : > { %1607 = vmatmul.msk.bf16.gmra.mxu1 %vm713_vm3, %v1963_v40 }
  0x6e   : > { %1616 = vmatmul.msk.bf16.gmra.mxu2 %vm713_vm3, %v1977_v45  ;;  %1625 = vmatmul.msk.bf16.gmra.mxu3 %vm713_vm3, %v1915_v10 }
  0x71   : > { %1634 = vmatmul.msk.bf16.gmra.mxu0 %vm713_vm3, %v1949_v31 }
  0x7d   : > { %1608 = vmatmul.msk.bf16.gmra.mxu1 %vm713_vm3, %v601_v33  ;;  %v638_v33 = vpack.c.b16 %v1694_v28, %v1694_v28 }
  0x7e   : > { %1617 = vmatmul.msk.bf16.gmra.mxu2 %vm713_vm3, %v603_v37  ;;  %1626 = vmatmul.msk.bf16.gmra.mxu3 %vm713_vm3, %v1949_v31 }
  0x7f   : > { %v652_v43 = vshll.u32 %v638_v33, 16 }
  0x81   : > { %1635 = vmatmul.msk.bf16.gmra.mxu0 %vm713_vm3, %v1918_v11 }
  0x8d   : > { %1609 = vmatmul.msk.bf16.gmra.mxu1 %vm713_vm3, %v1977_v45 }
  0x8e   : > { %1618 = vmatmul.msk.bf16.gmra.mxu2 %vm713_vm3, %v1981_v46  ;;  %1627 = vmatmul.msk.bf16.gmra.mxu3 %vm713_vm3, %v1918_v11 }
  0x91   : > { %1636 = vmatmul.msk.bf16.gmra.mxu0 %vm713_vm3, %v1970_v44 }
  0x9a   : > { %v2126_v40 = vpop.f32.mrf.mxu1 }
  0x9d   : > { %1610 = vmatmul.msk.bf16.gmra.mxu1 %vm713_vm3, %v603_v37  ;;  %v609_v37 = vrot.slane %v525_v42, 1  ;;  %v654_v42 = vrot.slane %v652_v43, 4 }
  0x9e   : > { %v751_v45 = vpop.f32.mrf.mxu0  ;;  %1619 = vmatmul.msk.bf16.gmra.mxu2 %vm713_vm3, %v605_v38  ;;  %1628 = vmatmul.msk.bf16.gmra.mxu3 %vm713_vm3, %v1970_v44  ;;  %v607_v38 = vrot.slane %v518_v55, 1 }
  0x9f   : > { %v610_v61 = vor.u32 %v609_v37, %v522_v35  ;;  %v613_v37 = vrot.slane %v539_v15, 1 }
  0xa0   : > { %v608_v58 = vor.u32 %v607_v38, %v515_v47  ;;  %v660_v38 = vshll.u32 %v640_v32, 16 }
  0xa1   : > { %1637 = vmatmul.msk.bf16.gmra.mxu0 %vm713_vm3, %v1921_v12  ;;  %v2138_v1 = vpop.f32.mrf.mxu2  ;;  %v2140_v2 = vpop.f32.mrf.mxu3  ;;  %v701_v17 = vsel %vm2183_vm7, %v610_v61, %v654_v42 }
  0xa2   : > { %v2142_v4 = vpop.f32.mrf.mxu1  ;;  %v700_v47 = vsel %vm2183_vm7, %v608_v58, %v650_v60  ;;  %v614_v60 = vor.u32 %v613_v37, %v536_v14  ;;  %v662_v61 = vrot.slane %v660_v38, 4 }
  0xa4   : > { %v703_v15 = vsel %vm2183_vm7, %v614_v60, %v662_v61 }
  0xa6   : > { %v753_v8 = vpop.f32.mrf.mxu0 }
  0xa9   : > { %v2149_v16 = vpop.f32.mrf.mxu2  ;;  %v2151_v20 = vpop.f32.mrf.mxu3 }
  0xaa   : > { %v2153_v22 = vpop.f32.mrf.mxu1 }
  0xad   : > { %1611 = vmatmul.msk.bf16.gmra.mxu1 %vm713_vm3, %v1981_v46  ;;  %v639_v46 = vpack.c.b16 %v1698_v30, %v1698_v30 }
  0xae   : > { %v756_v29 = vpop.f32.mrf.mxu0  ;;  %1620 = vmatmul.msk.bf16.gmra.mxu2 %vm713_vm3, %v606_v24  ;;  %1629 = vmatmul.msk.bf16.gmra.mxu3 %vm713_vm3, %v1921_v12 }
  0xaf   : > { %v656_v57 = vshll.u32 %v639_v46, 16 }
  0xb1   : > { %1638 = vmatmul.msk.bf16.gmra.mxu0 %vm713_vm3, %v1985_v49  ;;  %v2167_v26 = vpop.f32.mrf.mxu2  ;;  %v2169_v34 = vpop.f32.mrf.mxu3  ;;  %v658_v13 = vrot.slane %v656_v57, 4 }
  0xb2   : > { %v2171_v36 = vpop.f32.mrf.mxu1 }
  0xb3   : > { %v702_v24 = vsel %vm2183_vm7, %v612_v23, %v658_v13  ;;  %v1706_v23 = vunpack.c.h.b16 %v1949_v31 }
  0xb6   : > { %v758_v51 = vpop.f32.mrf.mxu0 }
  0xb9   : > { %v2187_v55 = vpop.f32.mrf.mxu2  ;;  %v2189_v6 = vpop.f32.mrf.mxu3 }
  0xba   : > { %v806_v9 = vpop.f32.mrf.mxu1 }
  0xbb   : > { %v807_v39 = vadd.f32 %v806_v9, %v751_v45 }
  0xbd   : > { %1640 = vmatmul.msk.bf16.vlgmr.msra.gmra.mxu1 %vm713_vm3, %v1997_v53 }
  0xbe   : > { %v1021_v35 = vpop.f32.mrf.mxu0  ;;  %1649 = vmatmul.msk.bf16.vlgmr.msra.gmra.mxu2 %vm713_vm3, %v700_v47  ;;  %1658 = vmatmul.msk.bf16.vlgmr.msra.gmra.mxu3 %vm713_vm3, %v701_v17 }
  0xc1   : > { %1667 = vmatmul.msk.bf16.vlgmr.msra.gmra.mxu0 %vm713_vm3, %v702_v24  ;;  %v863_v45 = vpop.f32.mrf.mxu2  ;;  %v949_v27 = vpop.f32.mrf.mxu3 }
  0xc2   : > { %v903_v28 = vadd.f32 %v863_v45, %v807_v39  ;;  %v808_v30 = vpop.f32.mrf.mxu1 }
  0xc3   : > { %v809_v33 = vadd.f32 %v808_v30, %v753_v8 }
  0xc4   : > { %v989_v46 = vadd.f32 %v949_v27, %v903_v28 }
  0xc6   : > { %v1023_v53 = vpop.f32.mrf.mxu0  ;;  %v2207_v41 = vadd.f32 %v1021_v35, %v989_v46  ;;  %v641_v35 = vpack.c.b16 %v1706_v23, %v1706_v23 }
  0xc8   : > { %v664_v27 = vshll.u32 %v641_v35, 16 }
  0xc9   : > { %v865_v43 = vpop.f32.mrf.mxu2  ;;  %v951_v50 = vpop.f32.mrf.mxu3 }
  0xca   : > { %v904_v57 = vadd.f32 %v865_v43, %v809_v33  ;;  %v811_v58 = vpop.f32.mrf.mxu1  ;;  %v666_v37 = vrot.slane %v664_v27, 4 }
  0xcb   : > { %v812_v42 = vadd.f32 %v811_v58, %v756_v29 }
  0xcc   : > { %v990_v9 = vadd.f32 %v951_v50, %v904_v57  ;;  %v1710_v50 = vunpack.c.h.b16 %v1918_v11 }
  0xcd   : > { %1641 = vmatmul.msk.bf16.gmra.mxu1 %vm713_vm3, %v1915_v10 }
  0xce   : > { %v1026_v8 = vpop.f32.mrf.mxu0  ;;  %1650 = vmatmul.msk.bf16.gmra.mxu2 %vm713_vm3, %v701_v17  ;;  %1659 = vmatmul.msk.bf16.gmra.mxu3 %vm713_vm3, %v702_v24  ;;  %v2218_v13 = vadd.f32 %v1023_v53, %v990_v9  ;;  %v615_v17 = vrot.slane %v546_v59, 1  ;;  %v642_v61 = vpack.c.b16 %v1710_v50, %v1710_v50  ;;  %v617_v9 = vrot.slane %v553_v19, 1 }
  0xd0   : > { %v616_v53 = vor.u32 %v615_v17, %v543_v48  ;;  %v618_v35 = vor.u32 %v617_v9, %v550_v18  ;;  %v1714_v17 = vunpack.c.h.b16 %v1970_v44 }
  0xd1   : > { %1668 = vmatmul.msk.bf16.gmra.mxu0 %vm713_vm3, %v703_v15  ;;  %v868_v14 = vpop.f32.mrf.mxu2  ;;  %v954_v29 = vpop.f32.mrf.mxu3 }
  0xd2   : > { %v905_v39 = vadd.f32 %v868_v14, %v812_v42  ;;  %v813_v47 = vpop.f32.mrf.mxu1  ;;  %v704_v59 = vsel %vm2183_vm7, %v616_v53, %v666_v37  ;;  %v619_v53 = vrot.slane %v560_v62, 1 }
  0xd3   : > { %v814_v10 = vadd.f32 %v813_v47, %v758_v51 }
  0xd4   : > { %v991_v0 = vadd.f32 %v954_v29, %v905_v39 }
  0xd6   : > { %v1028_v45 = vpop.f32.mrf.mxu0  ;;  %v2223_v28 = vadd.f32 %v1026_v8, %v991_v0  ;;  %v668_v8 = vshll.u32 %v642_v61, 16  ;;  %v1718_v61 = vunpack.c.h.b16 %v1921_v12 }
  0xd9   : > { %v870_v30 = vpop.f32.mrf.mxu2  ;;  %v956_v32 = vpop.f32.mrf.mxu3 }
  0xda   : > { %v906_v33 = vadd.f32 %v870_v30, %v814_v10  ;;  %v816_v46 = vpop.f32.mrf.mxu1  ;;  %v670_v10 = vrot.slane %v668_v8, 4  ;;  %v644_v8 = vpack.c.b16 %v1718_v61, %v1718_v61 }
  0xdb   : > { %v817_v38 = vadd.f32 %v816_v46, %v2126_v40 }
  0xdc   : > { %v992_v43 = vadd.f32 %v956_v32, %v906_v33  ;;  %v705_v19 = vsel %vm2183_vm7, %v618_v35, %v670_v10  ;;  %v643_v33 = vpack.c.b16 %v1714_v17, %v1714_v17 }
  0xdd   : > { %1642 = vmatmul.msk.bf16.gmra.mxu1 %vm713_vm3, %v1949_v31 }
  0xde   : > { %v1031_v51 = vpop.f32.mrf.mxu0  ;;  %1651 = vmatmul.msk.bf16.gmra.mxu2 %vm713_vm3, %v702_v24  ;;  %1660 = vmatmul.msk.bf16.gmra.mxu3 %vm713_vm3, %v703_v15  ;;  %v2235_v57 = vadd.f32 %v1028_v45, %v992_v43  ;;  %v672_v37 = vshll.u32 %v643_v33, 16 }
  0xe1   : > { %1669 = vmatmul.msk.bf16.gmra.mxu0 %vm713_vm3, %v704_v59  ;;  %v873_v48 = vpop.f32.mrf.mxu2  ;;  %v959_v40 = vpop.f32.mrf.mxu3 }
  0xe2   : > { %v907_v58 = vadd.f32 %v873_v48, %v817_v38  ;;  %v818_v60 = vpop.f32.mrf.mxu1 }
  0xe3   : > { %v819_v31 = vadd.f32 %v818_v60, %v2142_v4 }
  0xe4   : > { %v993_v42 = vadd.f32 %v959_v40, %v907_v58  ;;  %v620_v40 = vor.u32 %v619_v53, %v557_v52  ;;  %v674_v58 = vrot.slane %v672_v37, 4  ;;  %v623_v53 = vrot.slane %v574_v3, 1 }
  0xe6   : > { %v1033_v24 = vpop.f32.mrf.mxu0  ;;  %v2241_v23 = vadd.f32 %v1031_v51, %v993_v42  ;;  %v706_v62 = vsel %vm2183_vm7, %v620_v40, %v674_v58  ;;  %v624_v58 = vor.u32 %v623_v53, %v571_v56 }
  0xe9   : > { %v875_v14 = vpop.f32.mrf.mxu2  ;;  %v961_v29 = vpop.f32.mrf.mxu3 }
  0xea   : > { %v908_v39 = vadd.f32 %v875_v14, %v819_v31  ;;  %v821_v47 = vpop.f32.mrf.mxu1 }
  0xeb   : > { %v822_v0 = vadd.f32 %v821_v47, %v2153_v22 }
  0xec   : > { %v994_v45 = vadd.f32 %v961_v29, %v908_v39  ;;  %v621_v29 = vrot.slane %v567_v25, 1  ;;  %v676_v39 = vshll.u32 %v644_v8, 16 }
  0xed   : > { %1643 = vmatmul.msk.bf16.gmra.mxu1 %vm713_vm3, %v1918_v11 }
  0xee   : > { %v1036_v4 = vpop.f32.mrf.mxu0  ;;  %1652 = vmatmul.msk.bf16.gmra.mxu2 %vm713_vm3, %v703_v15  ;;  %1661 = vmatmul.msk.bf16.gmra.mxu3 %vm713_vm3, %v704_v59  ;;  %v2253_v27 = vadd.f32 %v1033_v24, %v994_v45  ;;  %v678_v17 = vrot.slane %v676_v39, 4 }
  0xf1   : > { %1670 = vmatmul.msk.bf16.gmra.mxu0 %vm713_vm3, %v705_v19  ;;  %v878_v18 = vpop.f32.mrf.mxu2  ;;  %v964_v22 = vpop.f32.mrf.mxu3 }
  0xf2   : > { %v909_v30 = vadd.f32 %v878_v18, %v822_v0  ;;  %v823_v32 = vpop.f32.mrf.mxu1 }
  0xf3   : > { %v824_v11 = vadd.f32 %v823_v32, %v2171_v36 }
  0xf4   : > { %v995_v46 = vadd.f32 %v964_v22, %v909_v30 }
  0xf6   : > { %v1038_v15 = vpop.f32.mrf.mxu0  ;;  %v2259_v38 = vadd.f32 %v1036_v4, %v995_v46  ;;  %v622_v4 = vor.u32 %v621_v29, %v564_v21 }
  0xf8   : > { %v707_v25 = vsel %vm2183_vm7, %v622_v4, %v678_v17 }
  0xf9   : > { %v880_v43 = vpop.f32.mrf.mxu2  ;;  %v966_v51 = vpop.f32.mrf.mxu3 }
  0xfa   : > { %v910_v50 = vadd.f32 %v880_v43, %v824_v11  ;;  %v826_v48 = vpop.f32.mrf.mxu1 }
  0xfb   : > { %v827_v42 = vadd.f32 %v826_v48, %v2138_v1 }
  0xfc   : > { %v996_v60 = vadd.f32 %v966_v51, %v910_v50 }
  0xfd   : > { %1644 = vmatmul.msk.bf16.gmra.mxu1 %vm713_vm3, %v1970_v44 }
  0xfe   : > { %v1041_v36 = vpop.f32.mrf.mxu0  ;;  %1653 = vmatmul.msk.bf16.gmra.mxu2 %vm713_vm3, %v704_v59  ;;  %1662 = vmatmul.msk.bf16.gmra.mxu3 %vm713_vm3, %v705_v19  ;;  %v2270_v31 = vadd.f32 %v1038_v15, %v996_v60 }
 0x101   : > { %1671 = vmatmul.msk.bf16.gmra.mxu0 %vm713_vm3, %v706_v62  ;;  %v883_v52 = vpop.f32.mrf.mxu2  ;;  %v969_v24 = vpop.f32.mrf.mxu3 }
 0x102   : > { %v911_v9 = vadd.f32 %v883_v52, %v827_v42  ;;  %v828_v44 = vpop.f32.mrf.mxu1 }
 0x103   : > { %v829_v35 = vadd.f32 %v828_v44, %v2149_v16  ;;  %v1722_v16 = vunpack.c.h.b16 %v1985_v49 }
 0x104   : > { %v997_v14 = vadd.f32 %v969_v24, %v911_v9 }
 0x105   : > { %v645_v46 = vpack.c.b16 %v1722_v16, %v1722_v16 }
 0x106   : > { %v1043_v59 = vpop.f32.mrf.mxu0  ;;  %v2276_v47 = vadd.f32 %v1041_v36, %v997_v14  ;;  %v625_v14 = vrot.slane %v581_v7, 1 }
 0x107   : > { %v680_v37 = vshll.u32 %v645_v46, 16 }
 0x109   : > { %v885_v10 = vpop.f32.mrf.mxu2  ;;  %v971_v0 = vpop.f32.mrf.mxu3  ;;  %v682_v60 = vrot.slane %v680_v37, 4 }
 0x10a   : > { %v912_v1 = vadd.f32 %v885_v10, %v829_v35  ;;  %v831_v45 = vpop.f32.mrf.mxu1 }
 0x10b   : > { %v832_v32 = vadd.f32 %v831_v45, %v2167_v26  ;;  %v708_v3 = vsel %vm2183_vm7, %v624_v58, %v682_v60 }
 0x10c   : > { %v998_v18 = vadd.f32 %v971_v0, %v912_v1  ;;  %v626_v1 = vor.u32 %v625_v14, %v578_v63 }
 0x10d   : > { %1645 = vmatmul.msk.bf16.gmra.mxu1 %vm713_vm3, %v1921_v12 }
 0x10e   : > { %v1046_v22 = vpop.f32.mrf.mxu0  ;;  %1654 = vmatmul.msk.bf16.gmra.mxu2 %vm713_vm3, %v705_v19  ;;  %1663 = vmatmul.msk.bf16.gmra.mxu3 %vm713_vm3, %v706_v62  ;;  %v2288_v30 = vadd.f32 %v1043_v59, %v998_v18 }
 0x111   : > { %1672 = vmatmul.msk.bf16.gmra.mxu0 %vm713_vm3, %v707_v25  ;;  %v888_v21 = vpop.f32.mrf.mxu2  ;;  %v974_v33 = vpop.f32.mrf.mxu3 }
 0x112   : > { %v913_v11 = vadd.f32 %v888_v21, %v832_v32  ;;  %v833_v12 = vpop.f32.mrf.mxu1 }
 0x113   : > { %v834_v51 = vadd.f32 %v833_v12, %v2187_v55  ;;  %v1690_v55 = vunpack.c.h.b16 %v2128_v54 }
 0x114   : > { %v999_v15 = vadd.f32 %v974_v33, %v913_v11 }
 0x115   : > { %v646_v44 = vpack.c.b16 %v1690_v55, %v1690_v55 }
 0x116   : > { %v1048_v19 = vpop.f32.mrf.mxu0  ;;  %v2294_v43 = vadd.f32 %v1046_v22, %v999_v15 }
 0x117   : > { %v684_v59 = vshll.u32 %v646_v44, 16 }
 0x119   : > { %v890_v50 = vpop.f32.mrf.mxu2  ;;  %v976_v48 = vpop.f32.mrf.mxu3  ;;  %v686_v45 = vrot.slane %v684_v59, 4 }
 0x11a   : > { %v914_v26 = vadd.f32 %v890_v50, %v834_v51  ;;  %v836_v40 = vpop.f32.mrf.mxu1 }
 0x11b   : > { %v837_v52 = vadd.f32 %v836_v40, %v2140_v2  ;;  %v709_v7 = vsel %vm2183_vm7, %v626_v1, %v686_v45 }
 0x11c   : > { %v1000_v36 = vadd.f32 %v976_v48, %v914_v26 }
 0x11d   : > { %1646 = vmatmul.msk.bf16.gmra.mxu1 %vm713_vm3, %v1985_v49 }
 0x11e   : > { %v1051_v61 = vpop.f32.mrf.mxu0  ;;  %1655 = vmatmul.msk.bf16.gmra.mxu2 %vm713_vm3, %v706_v62  ;;  %1664 = vmatmul.msk.bf16.gmra.mxu3 %vm713_vm3, %v707_v25  ;;  %v2306_v42 = vadd.f32 %v1048_v19, %v1000_v36 }
 0x121   : > { %1673 = vmatmul.msk.bf16.gmra.mxu0 %vm713_vm3, %v708_v3  ;;  %v893_v56 = vpop.f32.mrf.mxu2  ;;  %v979_v24 = vpop.f32.mrf.mxu3 }
 0x122   : > { %v915_v9 = vadd.f32 %v893_v56, %v837_v52  ;;  %v838_v49 = vpop.f32.mrf.mxu1 }
 0x123   : > { %v839_v39 = vadd.f32 %v838_v49, %v2151_v20 }
 0x124   : > { %v1001_v8 = vadd.f32 %v979_v24, %v915_v9 }
 0x126   : > { %v1053_v62 = vpop.f32.mrf.mxu0  ;;  %v2312_v29 = vadd.f32 %v1051_v61, %v1001_v8 }
 0x129   : > { %v895_v35 = vpop.f32.mrf.mxu2  ;;  %v981_v10 = vpop.f32.mrf.mxu3 }
 0x12a   : > { %v916_v2 = vadd.f32 %v895_v35, %v839_v39  ;;  %v841_v0 = vpop.f32.mrf.mxu1 }
 0x12b   : > { %v842_v18 = vadd.f32 %v841_v0, %v2169_v34 }
 0x12c   : > { %v1002_v4 = vadd.f32 %v981_v10, %v916_v2 }
 0x12d   : > { %1647 = vmatmul.msk.bf16.gmra.mxu1 %vm713_vm3, %v2128_v54 }
 0x12e   : > { %v1056_v17 = vpop.f32.mrf.mxu0  ;;  %1656 = vmatmul.msk.bf16.gmra.mxu2 %vm713_vm3, %v707_v25  ;;  %1665 = vmatmul.msk.bf16.gmra.mxu3 %vm713_vm3, %v708_v3  ;;  %v2323_v20 = vadd.f32 %v1053_v62, %v1002_v4 }
 0x131   : > { %1674 = vmatmul.msk.bf16.gmra.mxu0 %vm713_vm3, %v709_v7  ;;  %v898_v63 = vpop.f32.mrf.mxu2  ;;  %v984_v22 = vpop.f32.mrf.mxu3 }
 0x132   : > { %v917_v16 = vadd.f32 %v898_v63, %v842_v18  ;;  %v843_v32 = vpop.f32.mrf.mxu1 }
 0x133   : > { %v844_v25 = vadd.f32 %v843_v32, %v2189_v6  ;;  %v2337_v6 = vld [vmem:[%s2426_s4] ss:$0 sm:$0xff] }
 0x134   : > { %v1003_v21 = vadd.f32 %v984_v22, %v917_v16 }
 0x136   : > { %v1058_v54 = vpop.f32.mrf.mxu0  ;;  %v2327_v33 = vadd.f32 %v1056_v17, %v1003_v21 }
 0x139   : > { %v900_v11 = vpop.f32.mrf.mxu2  ;;  %v986_v5 = vpop.f32.mrf.mxu3 }
 0x13a   : > { %v918_v12 = vadd.f32 %v900_v11, %v844_v25  ;;  %v1093_v46 = vpop.f32.mrf.mxu1 }
 0x13b   : > { %v1133_v53 = vadd.f32 %v1093_v46, %v2207_v41 }
 0x13c   : > { %v1004_v15 = vadd.f32 %v986_v5, %v918_v12 }
 0x13e   : > { %v1333_v19 = vpop.f32.mrf.mxu0  ;;  %v2330_v34 = vadd.f32 %v1058_v54, %v1004_v15 }
 0x141   : > { %v1187_v37 = vpop.f32.mrf.mxu2  ;;  %v1260_v51 = vpop.f32.mrf.mxu3 }
 0x142   : > { %v1227_v50 = vadd.f32 %v1187_v37, %v1133_v53  ;;  %v1095_v48 = vpop.f32.mrf.mxu1 }
 0x143   : > { %v1134_v60 = vadd.f32 %v1095_v48, %v2218_v13 }
 0x144   : > { %v1300_v26 = vadd.f32 %v1260_v51, %v1227_v50 }
 0x146   : > { %v1373_v40 = vadd.f32 %v1333_v19, %v1300_v26  ;;  %v1335_v58 = vpop.f32.mrf.mxu0 }
 0x148   : > { %v1393_v41 = vadd.f32 %v2337_v6, %v1373_v40 }
 0x149   : > { %v1189_v36 = vpop.f32.mrf.mxu2  ;;  %v1262_v61 = vpop.f32.mrf.mxu3 }
 0x14a   : > { %1410 = vst.msk [vmem:[%s2342_s7] sm:$0xff] %vm1409_vm8, %v1393_v41  ;;  %v1228_v3 = vadd.f32 %v1189_v36, %v1134_v60  ;;  %v1098_v55 = vpop.f32.mrf.mxu1 }
 0x14b   : > { %v1135_v49 = vadd.f32 %v1098_v55, %v2223_v28 }
 0x14c   : > { %v1301_v52 = vadd.f32 %v1262_v61, %v1228_v3 }
 0x14e   : > { %v1374_v56 = vadd.f32 %v1335_v58, %v1301_v52  ;;  %v1338_v24 = vpop.f32.mrf.mxu0 }
 0x150   : > { %v1394_v9 = vadd.f32 %v2337_v6, %v1374_v56 }
 0x151   : > { %v1192_v44 = vpop.f32.mrf.mxu2  ;;  %v1265_v8 = vpop.f32.mrf.mxu3 }
 0x152   : > { %1411 = vst.msk [vmem:[%s2342_s7 + $0x8] sm:$0xff] %vm1409_vm8, %v1394_v9  ;;  %v1229_v62 = vadd.f32 %v1192_v44, %v1135_v49  ;;  %v1100_v13 = vpop.f32.mrf.mxu1 }
 0x153   : > { %v1136_v10 = vadd.f32 %v1100_v13, %v2235_v57 }
 0x154   : > { %v1302_v14 = vadd.f32 %v1265_v8, %v1229_v62 }
 0x156   : > { %v1375_v59 = vadd.f32 %v1338_v24, %v1302_v14  ;;  %v1340_v39 = vpop.f32.mrf.mxu0 }
 0x158   : > { %v1395_v35 = vadd.f32 %v2337_v6, %v1375_v59 }
 0x159   : > { %v1194_v2 = vpop.f32.mrf.mxu2  ;;  %v1267_v0 = vpop.f32.mrf.mxu3 }
 0x15a   : > { %1412 = vst.msk [vmem:[%s2342_s7 + $0x10] sm:$0xff] %vm1409_vm8, %v1395_v35  ;;  %v1230_v1 = vadd.f32 %v1194_v2, %v1136_v10  ;;  %v1103_v28 = vpop.f32.mrf.mxu1 }
 0x15b   : > { %v1137_v18 = vadd.f32 %v1103_v28, %v2241_v23 }
 0x15c   : > { %v1303_v45 = vadd.f32 %v1267_v0, %v1230_v1 }
 0x15e   : > { %v1376_v4 = vadd.f32 %v1340_v39, %v1303_v45  ;;  %v1343_v17 = vpop.f32.mrf.mxu0 }
 0x160   : > { %v1396_v7 = vadd.f32 %v2337_v6, %v1376_v4 }
 0x161   : > { %v1197_v63 = vpop.f32.mrf.mxu2  ;;  %v1270_v22 = vpop.f32.mrf.mxu3 }
 0x162   : > { %1413 = vst.msk [vmem:[%s2342_s7 + $0x18] sm:$0xff] %vm1409_vm8, %v1396_v7  ;;  %v1231_v16 = vadd.f32 %v1197_v63, %v1137_v18  ;;  %v1105_v57 = vpop.f32.mrf.mxu1 }
 0x163   : > { %v1138_v11 = vadd.f32 %v1105_v57, %v2253_v27 }
 0x164   : > { %v1304_v32 = vadd.f32 %v1270_v22, %v1231_v16 }
 0x166   : > { %v1377_v21 = vadd.f32 %v1343_v17, %v1304_v32  ;;  %v1345_v54 = vpop.f32.mrf.mxu0 }
 0x168   : > { %v1397_v25 = vadd.f32 %v2337_v6, %v1377_v21 }
 0x169   : > { %v1199_v5 = vpop.f32.mrf.mxu2  ;;  %v1272_v12 = vpop.f32.mrf.mxu3 }
 0x16a   : > { %1414 = vst.msk [vmem:[%s2342_s7 + $0x20] sm:$0xff] %vm1409_vm8, %v1397_v25  ;;  %v1232_v46 = vadd.f32 %v1199_v5, %v1138_v11  ;;  %v1108_v23 = vpop.f32.mrf.mxu1 }
 0x16b   : > { %v1139_v51 = vadd.f32 %v1108_v23, %v2259_v38 }
 0x16c   : > { %v1305_v15 = vadd.f32 %v1272_v12, %v1232_v46 }
 0x16e   : > { %v1378_v19 = vadd.f32 %v1345_v54, %v1305_v15  ;;  %v1348_v53 = vpop.f32.mrf.mxu0 }
 0x170   : > { %v1398_v37 = vadd.f32 %v2337_v6, %v1378_v19 }
 0x171   : > { %v1202_v50 = vpop.f32.mrf.mxu2  ;;  %v1275_v48 = vpop.f32.mrf.mxu3 }
 0x172   : > { %1415 = vst.msk [vmem:[%s2342_s7 + $0x28] sm:$0xff] %vm1409_vm8, %v1398_v37  ;;  %v1233_v26 = vadd.f32 %v1202_v50, %v1139_v51  ;;  %v1110_v27 = vpop.f32.mrf.mxu1 }
 0x173   : > { %v1140_v36 = vadd.f32 %v1110_v27, %v2270_v31 }
 0x174   : > { %v1306_v40 = vadd.f32 %v1275_v48, %v1233_v26 }
 0x176   : > { %v1379_v58 = vadd.f32 %v1348_v53, %v1306_v40  ;;  %v1350_v41 = vpop.f32.mrf.mxu0 }
 0x178   : > { %v1399_v60 = vadd.f32 %v2337_v6, %v1379_v58 }
 0x179   : > { %v1204_v61 = vpop.f32.mrf.mxu2  ;;  %v1277_v3 = vpop.f32.mrf.mxu3 }
 0x17a   : > { %1416 = vst.msk [vmem:[%s2342_s7 + $0x30] sm:$0xff] %vm1409_vm8, %v1399_v60  ;;  %v1234_v55 = vadd.f32 %v1204_v61, %v1140_v36  ;;  %v1113_v38 = vpop.f32.mrf.mxu1 }
 0x17b   : > { %v1141_v49 = vadd.f32 %v1113_v38, %v2276_v47 }
 0x17c   : > { %v1307_v52 = vadd.f32 %v1277_v3, %v1234_v55 }
 0x17e   : > { %v1380_v56 = vadd.f32 %v1350_v41, %v1307_v52  ;;  %v1353_v24 = vpop.f32.mrf.mxu0 }
 0x180   : > { %v1400_v9 = vadd.f32 %v2337_v6, %v1380_v56 }
 0x181   : > { %v1207_v44 = vpop.f32.mrf.mxu2  ;;  %v1280_v8 = vpop.f32.mrf.mxu3 }
 0x182   : > { %1417 = vst.msk [vmem:[%s2342_s7 + $0x38] sm:$0xff] %vm1409_vm8, %v1400_v9  ;;  %v1235_v62 = vadd.f32 %v1207_v44, %v1141_v49  ;;  %v1115_v31 = vpop.f32.mrf.mxu1 }
 0x183   : > { %v1142_v35 = vadd.f32 %v1115_v31, %v2288_v30 }
 0x184   : > { %v1308_v13 = vadd.f32 %v1280_v8, %v1235_v62 }
 0x186   : > { %v1381_v14 = vadd.f32 %v1353_v24, %v1308_v13  ;;  %v1355_v59 = vpop.f32.mrf.mxu0 }
 0x188   : > { %v1401_v39 = vadd.f32 %v2337_v6, %v1381_v14 }
 0x189   : > { %v1209_v10 = vpop.f32.mrf.mxu2  ;;  %v1282_v2 = vpop.f32.mrf.mxu3 }
 0x18a   : > { %1418 = vst.msk [vmem:[%s2342_s7 + $0x40] sm:$0xff] %vm1409_vm8, %v1401_v39  ;;  %v1236_v0 = vadd.f32 %v1209_v10, %v1142_v35  ;;  %v1118_v47 = vpop.f32.mrf.mxu1 }
 0x18b   : > { %v1143_v17 = vadd.f32 %v1118_v47, %v2294_v43 }
 0x18c   : > { %v1309_v1 = vadd.f32 %v1282_v2, %v1236_v0 }
 0x18e   : > { %v1382_v28 = vadd.f32 %v1355_v59, %v1309_v1  ;;  %v1358_v45 = vpop.f32.mrf.mxu0 }
 0x190   : > { %v1402_v4 = vadd.f32 %v2337_v6, %v1382_v28 }
 0x191   : > { %v1212_v7 = vpop.f32.mrf.mxu2  ;;  %v1285_v18 = vpop.f32.mrf.mxu3 }
 0x192   : > { %1419 = vst.msk [vmem:[%s2342_s7 + $0x48] sm:$0xff] %vm1409_vm8, %v1402_v4  ;;  %v1237_v63 = vadd.f32 %v1212_v7, %v1143_v17  ;;  %v1120_v30 = vpop.f32.mrf.mxu1 }
 0x193   : > { %v1144_v21 = vadd.f32 %v1120_v30, %v2306_v42 }
 0x194   : > { %v1310_v22 = vadd.f32 %v1285_v18, %v1237_v63 }
 0x196   : > { %v1383_v16 = vadd.f32 %v1358_v45, %v1310_v22  ;;  %v1360_v57 = vpop.f32.mrf.mxu0 }
 0x198   : > { %v1403_v32 = vadd.f32 %v2337_v6, %v1383_v16 }
 0x199   : > { %v1214_v54 = vpop.f32.mrf.mxu2  ;;  %v1287_v25 = vpop.f32.mrf.mxu3 }
 0x19a   : > { %1420 = vst.msk [vmem:[%s2342_s7 + $0x50] sm:$0xff] %vm1409_vm8, %v1403_v32  ;;  %v1238_v11 = vadd.f32 %v1214_v54, %v1144_v21  ;;  %v1123_v43 = vpop.f32.mrf.mxu1 }
 0x19b   : > { %v1145_v15 = vadd.f32 %v1123_v43, %v2312_v29 }
 0x19c   : > { %v1311_v5 = vadd.f32 %v1287_v25, %v1238_v11 }
 0x19e   : > { %v1384_v12 = vadd.f32 %v1360_v57, %v1311_v5  ;;  %v1363_v46 = vpop.f32.mrf.mxu0 }
 0x1a0   : > { %v1404_v23 = vadd.f32 %v2337_v6, %v1384_v12 }
 0x1a1   : > { %v1217_v19 = vpop.f32.mrf.mxu2  ;;  %v1290_v53 = vpop.f32.mrf.mxu3 }
 0x1a2   : > { %1421 = vst.msk [vmem:[%s2342_s7 + $0x58] sm:$0xff] %vm1409_vm8, %v1404_v23  ;;  %v1239_v37 = vadd.f32 %v1217_v19, %v1145_v15  ;;  %v1125_v42 = vpop.f32.mrf.mxu1 }
 0x1a3   : > { %v1146_v26 = vadd.f32 %v1125_v42, %v2323_v20 }
 0x1a4   : > { %v1312_v51 = vadd.f32 %v1290_v53, %v1239_v37 }
 0x1a6   : > { %v1385_v50 = vadd.f32 %v1363_v46, %v1312_v51  ;;  %v1365_v27 = vpop.f32.mrf.mxu0 }
 0x1a8   : > { %v1405_v48 = vadd.f32 %v2337_v6, %v1385_v50 }
 0x1a9   : > { %v1219_v40 = vpop.f32.mrf.mxu2  ;;  %v1292_v58 = vpop.f32.mrf.mxu3 }
 0x1aa   : > { %1422 = vst.msk [vmem:[%s2342_s7 + $0x60] sm:$0xff] %vm1409_vm8, %v1405_v48  ;;  %v1240_v41 = vadd.f32 %v1219_v40, %v1146_v26  ;;  %v1128_v29 = vpop.f32.mrf.mxu1 }
 0x1ab   : > { %v1147_v3 = vadd.f32 %v1128_v29, %v2327_v33 }
 0x1ac   : > { %v1313_v60 = vadd.f32 %v1292_v58, %v1240_v41 }
 0x1ae   : > { %v1386_v36 = vadd.f32 %v1365_v27, %v1313_v60  ;;  %v1368_v52 = vpop.f32.mrf.mxu0 }
 0x1b0   : > { %v1406_v61 = vadd.f32 %v2337_v6, %v1386_v36 }
 0x1b1   : > { %v1222_v55 = vpop.f32.mrf.mxu2  ;;  %v1295_v38 = vpop.f32.mrf.mxu3 }
 0x1b2   : > { %1423 = vst.msk [vmem:[%s2342_s7 + $0x68] sm:$0xff] %vm1409_vm8, %v1406_v61  ;;  %v1241_v20 = vadd.f32 %v1222_v55, %v1147_v3  ;;  %v1130_v24 = vpop.f32.mrf.mxu1 }
 0x1b3   : > { %v1148_v44 = vadd.f32 %v1130_v24, %v2330_v34 }
 0x1b4   : > { %v1314_v56 = vadd.f32 %v1295_v38, %v1241_v20 }
 0x1b6   : > { %v1387_v9 = vadd.f32 %v1368_v52, %v1314_v56  ;;  %v1370_v13 = vpop.f32.mrf.mxu0 }
 0x1b8   : > { %v1407_v49 = vadd.f32 %v2337_v6, %v1387_v9 }
 0x1b9   : > { %v1224_v8 = vpop.f32.mrf.mxu2  ;;  %v1297_v31 = vpop.f32.mrf.mxu3 }
 0x1ba   : > { %1424 = vst.msk [vmem:[%s2342_s7 + $0x70] sm:$0xff] %vm1409_vm8, %v1407_v49  ;;  %v1242_v62 = vadd.f32 %v1224_v8, %v1148_v44 }
 0x1bc   : > { %v1315_v33 = vadd.f32 %v1297_v31, %v1242_v62 }
 0x1be   : > { %v1388_v14 = vadd.f32 %v1370_v13, %v1315_v33 }
 0x1c0   : > { %v1408_v59 = vadd.f32 %v2337_v6, %v1388_v14 }
 0x1c2   : > { %1425 = vst.msk [vmem:[%s2342_s7 + $0x78] sm:$0xff] %vm1409_vm8, %v1408_v59 }
 0x1c3 PF: > { %s15_s22 = sadd.s32 1, %s1812_s22   ;;  %s2432_s18 = smov %s1804_s20 }
 0x1c4   : > { %p12_p11 = scmp.ge.s32.totalorder %s15_s22, 6   ;;  %s2433_s19 = smov %s1808_s21 }
 0x1c5   : > { %s2434_s20 = smov %s2437_s23  ;;  %s2435_s21 = smov %s2441_s24 }
 0x1c6   :  { %14 = sbr.rel (!%p12_p11) target bundleno = 3 (0x3), region = 84 }

</bundles_post_ra>
